<compile_context>
chip_gen: v5e
topology: v5e:2x2
jax: 0.10.0
libtpu: 0.0.40
codegen_flags: <defaults>
</compile_context>

<pallas_src>
import jax
import jax.numpy as jnp
from jax.experimental import pallas as pl
from jax.experimental.pallas import tpu as pltpu

# ----------------------------------------------------------------------------
# num_to_chinese4 (verbatim semantics from the reference module)
# ----------------------------------------------------------------------------
_MAPPING = (u'零', u'一', u'二', u'三', u'四', u'五', u'六', u'七', u'八', u'九',
            u'十', u'十一', u'十二', u'十三', u'十四', u'十五', u'十六', u'十七',
            u'十八', u'十九')
_P0 = (u'', u'十', u'百', u'千')
_S4 = 10 ** 4


def num_to_chinese4(num):
    assert 0 <= num and num < _S4
    if num < 20:
        return _MAPPING[num]
    else:
        lst = []
        while num >= 10:
            lst.append(num % 10)
            num = num / 10
        lst.append(num)
        c = len(lst)
        result = u''
        for idx, val in enumerate(lst):
            val = int(val)
            if val != 0:
                result += _P0[idx] + _MAPPING[val]
                if idx < c - 1 and lst[idx + 1] == 0:
                    result += u'零'
        return result[::-1]


# ----------------------------------------------------------------------------
# Fused Pallas kernel:  out = relu(x @ W1 + b1) @ W2_sel + b2_sel
# ----------------------------------------------------------------------------
def _round_up(x, m):
    return ((x + m - 1) // m) * m


def _choose_tile(M):
    """Row-tile heuristic (perf review):
       * multiple of 16 (bf16 sublane packing, clean vreg loads),
       * >= 2 grid steps when M >= 32 so the 'parallel' axis shards across
         both v7x TensorCores (no effect on single-TC v5e/v6e),
       * capped at 256 to keep the f32 ReLU intermediate within the vreg file
         while still amortizing the ~0.35 us per-grid-step overhead."""
    if M >= 32:
        tm = min(256, _round_up(pl.cdiv(M, 2), 16))
    else:
        tm = _round_up(max(M, 16), 16)
    Mp = _round_up(M, tm)
    return tm, Mp


def _fused_mlp_head_kernel(x_ref, w1_ref, b1_ref, w2_ref, b2_ref, o_ref):
    # encoder dense + ReLU (bf16 MXU operands, f32 accumulation); h stays in VMEM
    h = jnp.dot(x_ref[...], w1_ref[...], preferred_element_type=jnp.float32)
    h = jnp.maximum(h + b1_ref[...], 0.0)
    # label-word head over the pre-gathered W2 columns; direct lane-dense store
    o_ref[...] = (jnp.dot(h.astype(w2_ref.dtype), w2_ref[...],
                          preferred_element_type=jnp.float32)
                  + b2_ref[...]).astype(o_ref.dtype)


def fused_mlp_head(x, w1, b1, w2, b2, *, tm, out_dtype=jnp.float32):
    """One pallas_call computing relu(x @ w1 + b1) @ w2 + b2.

    x:  [M, K] bf16 with M divisible by tm (caller pads the tiny index vectors
        upstream so no extra HBM copy of x is ever made here)
    w1: [K, H] bf16   b1: [H] f32
    w2: [H, N] bf16 (pre-gathered label-word columns, N a multiple of 128)
    b2: [N]   f32
    out: [M, N] f32

    Weights are fully VMEM-resident (tiny).  For a full ~30k-word MLM vocab
    add an N-tile grid axis and an explicit vmem_limit_bytes (v7x scoped VMEM
    default is 32 MiB of 64 MiB physical).
    """
    M, K = x.shape
    K2, H = w1.shape
    H2, N = w2.shape
    assert K == K2 and H == H2
    assert M % tm == 0 and N % 128 == 0

    return pl.pallas_call(
        _fused_mlp_head_kernel,
        out_shape=jax.ShapeDtypeStruct((M, N), out_dtype),
        grid_spec=pltpu.PrefetchScalarGridSpec(
            num_scalar_prefetch=0,
            grid=(M // tm,),
            in_specs=[
                pl.BlockSpec((tm, K), lambda i: (i, 0)),   # x rows, streamed
                pl.BlockSpec((K, H), lambda i: (0, 0)),    # W1 resident
                pl.BlockSpec((1, H), lambda i: (0, 0)),    # b1
                pl.BlockSpec((H, N), lambda i: (0, 0)),    # W2 (selected cols) resident
                pl.BlockSpec((1, N), lambda i: (0, 0)),    # b2 (selected)
            ],
            out_specs=pl.BlockSpec((tm, N), lambda i: (i, 0)),
        ),
        compiler_params=pltpu.CompilerParams(
            dimension_semantics=("parallel",)),
    )(x, w1, b1.reshape(1, H), w2, b2.reshape(1, N))


# ----------------------------------------------------------------------------
# Model
# ----------------------------------------------------------------------------
class MultiTaskClassifierPallas:
    def __init__(self, key, vocab_size=256, hidden=128, emotion_labels_num=None):
        if emotion_labels_num is None:
            emotion_labels_num = {'none': 3, 'happiness': 2, 'sadness': 2,
                                  'fear': 2, 'anger': 2, 'disgust': 2,
                                  'surprise': 2}
        self.emotion_labels_num = emotion_labels_num
        self.V = vocab_size
        self.H = hidden

        ks = jax.random.split(key, 9)
        s = 0.02
        # synthetic MLM backbone (stand-in for AutoModelForMaskedLM)
        self.tok_emb = jax.random.normal(ks[0], (vocab_size, hidden), jnp.float32) * s
        self.seg_emb = jax.random.normal(ks[1], (2, hidden), jnp.float32) * s
        self.enc_w = (jax.random.normal(ks[2], (hidden, hidden), jnp.float32) * s
                      ).astype(jnp.bfloat16)
        self.enc_b = jnp.zeros((hidden,), jnp.float32)
        self.mlm_w = (jax.random.normal(ks[3], (hidden, vocab_size), jnp.float32) * s
                      ).astype(jnp.bfloat16)
        self.mlm_b = jnp.zeros((vocab_size,), jnp.float32)
        # parameters declared in __init__ but unused in forward (mirrors reference)
        self.mlp_w1 = jax.random.normal(ks[4], (hidden, hidden), jnp.float32) * s
        self.mlp_b1 = jnp.zeros((hidden,), jnp.float32)
        self.mlp_w2 = jax.random.normal(ks[5], (hidden, hidden), jnp.float32) * s
        self.mlp_b2 = jnp.zeros((hidden,), jnp.float32)
        self.extra_token_embeddings = jax.random.normal(ks[6], (5, hidden), jnp.float32) * s

        # emotion label-word group-averaging matrix [E_total, G]
        gs = tuple(self.emotion_labels_num.values())
        rows = []
        for g, n in enumerate(gs):
            rows += [[1.0 / n if j == g else 0.0 for j in range(len(gs))]] * n
        self.emo_avg = jnp.array(rows, jnp.float32)

    def _convert_token_to_id(self, w):
        # TODO(synk): deterministic stand-in for bert_tokenizer.convert_tokens_to_ids
        return (sum(ord(c) for c in w) % (self.V - 20)) + 20

    def forward(self, bert_token_idx, bert_segments_idx, bert_masks_idx,
                bert_clause_idx, bert_token_idx_prompt, bert_segments_idx_prompt,
                bert_masks_idx_prompt, bert_clause_idx_prompt, prompt_word_ids):
        H = self.H
        n_clause = bert_clause_idx.shape[1]
        step = len(prompt_word_ids)                      # == 3 (emotion/cause/relation slots)

        # ---- static label-word vocab ids (known at trace time) ----
        clause_id = [num_to_chinese4(i + 1) for i in range(n_clause)]
        clause_id_relation = ['没有'] + clause_id
        relation_ids = [self._convert_token_to_id(w) for w in clause_id_relation]
        emotion_ids = list(prompt_word_ids[0])
        cause_ids = list(prompt_word_ids[1])
        n_emo, n_cau, n_rel = len(emotion_ids), len(cause_ids), len(relation_ids)

        # Pre-gather the MLM head columns for all label words and pad the
        # column axis to a lane-dense 128: the kernel never materializes the
        # full V-wide logits (exactly equivalent, matmul is linear per column).
        sel_ids = jnp.array(emotion_ids + cause_ids + relation_ids, jnp.int32)
        n_sel = int(sel_ids.shape[0])
        n_sel_pad = _round_up(n_sel, 128)
        w2_sel = jnp.zeros((H, n_sel_pad), jnp.bfloat16).at[:, :n_sel].set(
            self.mlm_w[:, sel_ids])
        b2_sel = jnp.zeros((n_sel_pad,), jnp.float32).at[:n_sel].set(
            self.mlm_b[sel_ids])

        # ---- gather only the clause-prompt positions ----
        B = bert_token_idx_prompt.shape[0]
        pos = bert_clause_idx_prompt                     # [B, step * n_clause], clause-major
        bidx = jnp.arange(B)[:, None]
        tok = bert_token_idx_prompt[bidx, pos].reshape(-1)       # [M]
        seg = bert_segments_idx_prompt[bidx, pos].reshape(-1)
        msk = bert_masks_idx_prompt[bidx, pos].reshape(-1)

        M = B * step * n_clause
        tm, Mp = _choose_tile(M)
        if Mp != M:
            # Pad the tiny int index vectors (fuses into the gather below) so the
            # activation x is built directly at the padded size -- no jnp.pad of
            # the [M, H] activation and no extra HBM round trip.
            pad = Mp - M
            tok = jnp.pad(tok, (0, pad))
            seg = jnp.pad(seg, (0, pad))
            msk = jnp.pad(msk, (0, pad))

        # TODO(synk): the pretrained BERT's full-sequence self-attention is not
        # reproduced; mask-multiply on the embeddings is a stand-in for the
        # attention mask, and the per-token dense+head acts only on the gathered
        # prompt positions (equivalent for this synthetic backbone).
        # TODO(synk): the embedding gather itself could be pulled into the kernel
        # via scalar prefetch + DMA gather; left in XLA at these tiny sizes.
        h0 = (self.tok_emb[tok] + self.seg_emb[seg]) * msk[:, None].astype(jnp.float32)
        x = h0.astype(jnp.bfloat16)                      # [Mp, H]

        sel_logits = fused_mlp_head(x, self.enc_w, self.enc_b, w2_sel, b2_sel, tm=tm)
        sel_logits = sel_logits[:M].reshape(B, n_clause, step, n_sel_pad)

        # ---- slot / label-word selection (mirrors the python while-loop) ----
        emotion_full = sel_logits[:, :, 0, 0:n_emo]                       # [B, n_c, 15]
        cause_output = sel_logits[:, :, 1, n_emo:n_emo + n_cau]           # [B, n_c, 2]
        relation_output = sel_logits[:, :, 2,
                                     n_emo + n_cau:n_emo + n_cau + n_rel]  # [B, n_c, n_c+1]

        # ---- emotion label-word group averaging (tiny jnp matmul, XLA-fused) ----
        emotion_output = jnp.einsum('bce,eg->bcg', emotion_full, self.emo_avg)

        return emotion_output, cause_output, relation_output


# ----------------------------------------------------------------------------
# main
# ----------------------------------------------------------------------------
if __name__ == "__main__":
    key = jax.random.PRNGKey(0)
    k_model, k_tok, k_seg = jax.random.split(key, 3)

    B, S, n_clause = 2, 16, 4
    V, H = 256, 128

    model = MultiTaskClassifierPallas(k_model, vocab_size=V, hidden=H)

    # prompt-side inputs (the only ones the forward actually consumes heavily)
    bert_token_idx_prompt = jax.random.randint(k_tok, (B, S), 0, V, jnp.int32)
    bert_segments_idx_prompt = jax.random.randint(k_seg, (B, S), 0, 2, jnp.int32)
    bert_masks_idx_prompt = jnp.ones((B, S), jnp.int32)
    # n_clause clauses * 3 prompt slots (emotion / cause / relation) per clause,
    # laid out clause-major like the reference index layout
    bert_clause_idx_prompt = jnp.stack(
        [jnp.arange(n_clause * 3, dtype=jnp.int32) + 1,
         jnp.arange(n_clause * 3, dtype=jnp.int32) + 3], axis=0)       # [2, 12]

    # non-prompt inputs (present in the signature; only bert_clause_idx.shape used)
    bert_token_idx = jnp.zeros((B, S), jnp.int32)
    bert_segments_idx = jnp.zeros((B, S), jnp.int32)
    bert_masks_idx = jnp.ones((B, S), jnp.int32)
    bert_clause_idx = jnp.zeros((B, n_clause), jnp.int32)

    # label-word vocab ids: 15 emotion words (7 groups), 2 cause words, 1 relation slot
    prompt_word_ids = [list(range(100, 115)), [120, 121], [130]]

    emotion_output, cause_output, relation_output = model.forward(
        bert_token_idx, bert_segments_idx, bert_masks_idx, bert_clause_idx,
        bert_token_idx_prompt, bert_segments_idx_prompt, bert_masks_idx_prompt,
        bert_clause_idx_prompt, prompt_word_ids)

    jax.block_until_ready((emotion_output, cause_output, relation_output))
    assert emotion_output.shape == (B, n_clause, 7)
    assert cause_output.shape == (B, n_clause, 2)
    assert relation_output.shape == (B, n_clause, n_clause + 1)
    print("KERNEL_OK")
</pallas_src>

<mosaic_0001>
module attributes {stable_mosaic.version = 11 : i64} {
  func.func @_fused_mlp_head_kernel(%arg0: i32, %arg1: memref<32x128xbf16, #tpu.memory_space<vmem>>, %arg2: memref<128x128xbf16, #tpu.memory_space<vmem>>, %arg3: memref<1x128xf32, #tpu.memory_space<vmem>>, %arg4: memref<128x128xbf16, #tpu.memory_space<vmem>>, %arg5: memref<1x128xf32, #tpu.memory_space<vmem>>, %arg6: memref<32x128xf32, #tpu.memory_space<vmem>>) attributes {dimension_semantics = [#tpu.dimension_semantics<parallel>], iteration_bounds = array<i64: 1>, scalar_prefetch = 0 : i64, scratch_operands = 0 : i64, tpu.core_type = #tpu.core_type<tc>, window_params = [{transform_indices = @transform_0, window_bounds = array<i64: 32, 128>}, {pipeline_mode = #tpu.pipeline_mode<synchronous>, transform_indices = @transform_1, window_bounds = array<i64: 128, 128>}, {pipeline_mode = #tpu.pipeline_mode<synchronous>, transform_indices = @transform_2, window_bounds = array<i64: 1, 128>}, {pipeline_mode = #tpu.pipeline_mode<synchronous>, transform_indices = @transform_3, window_bounds = array<i64: 128, 128>}, {pipeline_mode = #tpu.pipeline_mode<synchronous>, transform_indices = @transform_4, window_bounds = array<i64: 1, 128>}, {transform_indices = @transform_5, window_bounds = array<i64: 32, 128>}]} {
    %c0 = arith.constant 0 : index
    %c0_0 = arith.constant 0 : index
    %0 = vector.load %arg1[%c0, %c0_0] : memref<32x128xbf16, #tpu.memory_space<vmem>>, vector<32x128xbf16>
    %c0_1 = arith.constant 0 : index
    %c0_2 = arith.constant 0 : index
    %1 = vector.load %arg2[%c0_1, %c0_2] : memref<128x128xbf16, #tpu.memory_space<vmem>>, vector<128x128xbf16>
    %cst = arith.constant dense<0.000000e+00> : vector<32x128xf32>
    %2 = tpu.matmul %0, %1, %cst {dimension_numbers = #tpu.dot_dimension_numbers<[1], [0], [0], [1], [0, 0, 1, 1], [], []>} : vector<32x128xbf16>, vector<128x128xbf16>, vector<32x128xf32> -> vector<32x128xf32>
    %c0_3 = arith.constant 0 : index
    %c0_4 = arith.constant 0 : index
    %3 = vector.load %arg3[%c0_3, %c0_4] : memref<1x128xf32, #tpu.memory_space<vmem>>, vector<1x128xf32>
    %4 = vector.broadcast %3 : vector<1x128xf32> to vector<32x128xf32>
    %5 = arith.addf %2, %4 : vector<32x128xf32>
    %cst_5 = arith.constant 0.000000e+00 : f32
    %6 = vector.broadcast %cst_5 : f32 to vector<32x128xf32>
    %7 = arith.maximumf %5, %6 : vector<32x128xf32>
    %8 = arith.truncf %7 : vector<32x128xf32> to vector<32x128xbf16>
    %c0_6 = arith.constant 0 : index
    %c0_7 = arith.constant 0 : index
    %9 = vector.load %arg4[%c0_6, %c0_7] : memref<128x128xbf16, #tpu.memory_space<vmem>>, vector<128x128xbf16>
    %cst_8 = arith.constant dense<0.000000e+00> : vector<32x128xf32>
    %10 = tpu.matmul %8, %9, %cst_8 {dimension_numbers = #tpu.dot_dimension_numbers<[1], [0], [0], [1], [0, 0, 1, 1], [], []>} : vector<32x128xbf16>, vector<128x128xbf16>, vector<32x128xf32> -> vector<32x128xf32>
    %c0_9 = arith.constant 0 : index
    %c0_10 = arith.constant 0 : index
    %11 = vector.load %arg5[%c0_9, %c0_10] : memref<1x128xf32, #tpu.memory_space<vmem>>, vector<1x128xf32>
    %12 = vector.broadcast %11 : vector<1x128xf32> to vector<32x128xf32>
    %13 = arith.addf %10, %12 : vector<32x128xf32>
    %c0_11 = arith.constant 0 : index
    %c0_12 = arith.constant 0 : index
    %14 = vector.load %arg6[%c0_11, %c0_12] : memref<32x128xf32, #tpu.memory_space<vmem>>, vector<32x128xf32>
    tpu.vector_store %arg6[%c0_11, %c0_12], %13 {strides = array<i32>} : memref<32x128xf32, #tpu.memory_space<vmem>>, vector<32x128xf32>,
    return
  }
  func.func @transform_0(%arg0: i32) -> (i32, i32) {
    %c0_i32 = arith.constant 0 : i32
    %c0_i32_0 = arith.constant 0 : i32
    return %arg0, %c0_i32 : i32, i32
  }
  func.func @transform_1(%arg0: i32) -> (i32, i32) {
    %c0_i32 = arith.constant 0 : i32
    %c0_i32_0 = arith.constant 0 : i32
    %c0_i32_1 = arith.constant 0 : i32
    return %c0_i32, %c0_i32_0 : i32, i32
  }
  func.func @transform_2(%arg0: i32) -> (i32, i32) {
    %c0_i32 = arith.constant 0 : i32
    %c0_i32_0 = arith.constant 0 : i32
    %c0_i32_1 = arith.constant 0 : i32
    return %c0_i32, %c0_i32_0 : i32, i32
  }
  func.func @transform_3(%arg0: i32) -> (i32, i32) {
    %c0_i32 = arith.constant 0 : i32
    %c0_i32_0 = arith.constant 0 : i32
    %c0_i32_1 = arith.constant 0 : i32
    return %c0_i32, %c0_i32_0 : i32, i32
  }
  func.func @transform_4(%arg0: i32) -> (i32, i32) {
    %c0_i32 = arith.constant 0 : i32
    %c0_i32_0 = arith.constant 0 : i32
    %c0_i32_1 = arith.constant 0 : i32
    return %c0_i32, %c0_i32_0 : i32, i32
  }
  func.func @transform_5(%arg0: i32) -> (i32, i32) {
    %c0_i32 = arith.constant 0 : i32
    %c0_i32_0 = arith.constant 0 : i32
    return %arg0, %c0_i32 : i32, i32
  }
}

</mosaic_0001>

<bundles_post_ra>
// kernel: tpu_custom_call.1
= control target key start
LH: loop header
LB: loop body
LE: loop exit
PB: predicated region body
PF: predicated region fallthrough
CT: control target
= control target key end

     0   :  { %10 = vsyncpa [#allocation3], 0  ;;  %s562_s0 = inlined_call_operand.hbm [shape: bf16[32,128], index: 0, kind: input, shape index: {}]   ;;  %s563_s1 = inlined_call_operand.hbm [shape: bf16[128,128], index: 1, kind: input, shape index: {}]   ;;  %s564_s2 = inlined_call_operand.vmem [shape: f32[1,128], index: 2, kind: input, shape index: {}]   ;;  %s565_s3 = inlined_call_operand.hbm [shape: bf16[128,128], index: 3, kind: input, shape index: {}]   ;;  %s566_s4 = inlined_call_operand.vmem [shape: f32[1,128], index: 4, kind: input, shape index: {}]   ;;  %s567_s5 = inlined_call_operand.hbm [shape: f32[32,128], index: 5, kind: output, shape index: {}]  }
   0x1   :  { %11 = vsyncpa [#allocation6], 0 }
   0x2   :  { %12 = vsyncpa [#allocation4], 0  ;;  %s30_s20 = sshll.u32 %s563_s1, 4  ;;  %s506_s21 = smov [#allocation5]   ;;  %s31_s20 = int_to_ptr.hbm [resolvable:$true] %s30_s20 }
   0x3   :  { %s32_s22 = sshll.u32 %s506_s21, 4  ;;  %s17_s25 = sshll.u32 %s562_s0, 4  ;;  %s33_s22 = int_to_ptr.vmem [resolvable:$true] %s32_s22  ;;  %s18_s25 = int_to_ptr.hbm [resolvable:$true] %s17_s25 }
   0x4   :  { %s507_s26 = smov 64   ;;  %s508_s27 = smov 4  }
   0x5   :  { %38 = dma.hbm_to_vmem [thread:$0]  %s31_s20, 1024, %s33_s22, [#allocation6], %s507_s26, %s507_s26, %s508_s27  }
   0x6   :  { %s509_s28 = smov [#allocation2]   ;;  %s45_s7 = sshll.u32 %s565_s3, 4  ;;  %s46_s7 = int_to_ptr.hbm [resolvable:$true] %s45_s7 }
   0x7   :  { %s19_s29 = sshll.u32 %s509_s28, 4  ;;  %s510_s1 = smov [#allocation7]   ;;  %s20_s29 = int_to_ptr.vmem [resolvable:$true] %s19_s29 }
   0x8   :  { %25 = dma.hbm_to_vmem [thread:$0]  %s18_s25, 256, %s20_s29, [#allocation3], %s507_s26, %s507_s26, %s508_s27  }
   0x9   :  { %s47_s8 = sshll.u32 %s510_s1, 4  ;;  %s48_s8 = int_to_ptr.vmem [resolvable:$true] %s47_s8 }
   0xa   :  { %53 = dma.hbm_to_vmem [thread:$0]  %s46_s7, 1024, %s48_s8, [#allocation6], %s507_s26, %s507_s26, %s508_s27  }
   0xb   :  { %500 = dma.done.wait [#allocation3], 256  }
   0xc   :  { %501 = vsyncadd [#allocation3], 4294967040 }
   0xd   :  { %502 = dma.done.wait [#allocation6], 2048  }
   0xe   :  { %503 = vsyncadd [#allocation6], 4294965248  ;;  %v369_v0 = vld [vmem:[#allocation5 + $0x38] sm:$0xff]  ;;  %v368_v1 = vld [vmem:[#allocation5 + $0x30] sm:$0xff]  ;;  %s274_s14 = sshll.u32 %s567_s5, 4  ;;  %s513_s15 = smov 8   ;;  %s275_s14 = int_to_ptr.hbm [resolvable:$true] %s274_s14 }
   0xf   :  { %152 = vmatpush.bf16.msra.mxu0 %v369_v0  ;;  %378 = vmatpush.bf16.msra.mxu2 %v369_v0  ;;  %v377_v2 = vld [vmem:[#allocation7 + $0x38] sm:$0xff]  ;;  %v376_v3 = vld [vmem:[#allocation7 + $0x30] sm:$0xff]  ;;  %v367_v4 = vld [vmem:[#allocation5 + $0x28] sm:$0xff] }
  0x10   :  { %245 = vmatpush.bf16.msra.mxu1 %v377_v2  ;;  %386 = vmatpush.bf16.msra.mxu3 %v377_v2  ;;  %v375_v5 = vld [vmem:[#allocation7 + $0x28] sm:$0xff]  ;;  %v366_v6 = vld [vmem:[#allocation5 + $0x20] sm:$0xff]  ;;  %v365_v8 = vld [vmem:[#allocation5 + $0x18] sm:$0xff] }
  0x11   :  { %v374_v7 = vld [vmem:[#allocation7 + $0x20] sm:$0xff]  ;;  %v364_v9 = vld [vmem:[#allocation5 + $0x10] sm:$0xff]  ;;  %v363_v10 = vld [vmem:[#allocation5 + $0x8] sm:$0xff] }
  0x12   :  { %v362_v11 = vld [vmem:[#allocation5] sm:$0xff]  ;;  %v360_v12 = vld [vmem:[#allocation2] sm:$0xff]  ;;  %v361_v13 = vld [vmem:[#allocation2 + $0x8] sm:$0xff] }
  0x13   :  { %153 = vmatpush.bf16.msra.mxu0 %v368_v1  ;;  %379 = vmatpush.bf16.msra.mxu2 %v368_v1  ;;  %v373_v14 = vld [vmem:[#allocation7 + $0x18] sm:$0xff]  ;;  %v372_v15 = vld [vmem:[#allocation7 + $0x10] sm:$0xff]  ;;  %v371_v16 = vld [vmem:[#allocation7 + $0x8] sm:$0xff] }
  0x14   :  { %246 = vmatpush.bf16.msra.mxu1 %v376_v3  ;;  %387 = vmatpush.bf16.msra.mxu3 %v376_v3  ;;  %v370_v17 = vld [vmem:[#allocation7] sm:$0xff]  ;;  %v402_v19 = vld [vmem:[%s564_s2] ss:$0 sm:$0xff]  ;;  %s511_s2 = smov [#allocation8]  }
  0x15   :  { %v403_v33 = vld [vmem:[%s566_s4] ss:$0 sm:$0xff]  ;;  %s272_s11 = sshll.u32 %s511_s2, 4  ;;  %s512_s4 = smov 128   ;;  %s273_s11 = int_to_ptr.vmem [resolvable:$true] %s272_s11 }
  0x17   :  { %154 = vmatpush.bf16.msra.mxu0 %v367_v4  ;;  %380 = vmatpush.bf16.msra.mxu2 %v367_v4 }
  0x18   :  { %247 = vmatpush.bf16.msra.mxu1 %v375_v5  ;;  %388 = vmatpush.bf16.msra.mxu3 %v375_v5 }
  0x1b   :  { %155 = vmatpush.bf16.msra.mxu0 %v366_v6  ;;  %381 = vmatpush.bf16.msra.mxu2 %v366_v6 }
  0x1c   :  { %248 = vmatpush.bf16.msra.mxu1 %v374_v7  ;;  %389 = vmatpush.bf16.msra.mxu3 %v374_v7 }
  0x1f   :  { %156 = vmatpush.bf16.msra.mxu0 %v365_v8  ;;  %382 = vmatpush.bf16.msra.mxu2 %v365_v8 }
  0x20   :  { %249 = vmatpush.bf16.msra.mxu1 %v373_v14  ;;  %390 = vmatpush.bf16.msra.mxu3 %v373_v14 }
  0x23   :  { %157 = vmatpush.bf16.msra.mxu0 %v364_v9  ;;  %383 = vmatpush.bf16.msra.mxu2 %v364_v9 }
  0x24   :  { %250 = vmatpush.bf16.msra.mxu1 %v372_v15  ;;  %391 = vmatpush.bf16.msra.mxu3 %v372_v15 }
  0x27   :  { %158 = vmatpush.bf16.msra.mxu0 %v363_v10  ;;  %384 = vmatpush.bf16.msra.mxu2 %v363_v10 }
  0x28   :  { %251 = vmatpush.bf16.msra.mxu1 %v371_v16  ;;  %392 = vmatpush.bf16.msra.mxu3 %v371_v16 }
  0x2b   :  { %159 = vmatpush.bf16.msra.mxu0 %v362_v11  ;;  %385 = vmatpush.bf16.msra.mxu2 %v362_v11 }
  0x2c   :  { %252 = vmatpush.bf16.msra.mxu1 %v370_v17  ;;  %393 = vmatpush.bf16.msra.mxu3 %v370_v17 }
  0x2e   :  { %160 = vmatmul.bf16.vlgmr.msra.gmra.mxu0 %v360_v12  ;;  %165 = vmatmul.bf16.vlgmr.msra.gmra.mxu2 %v361_v13 }
  0xab   :  { %v161_v18 = vpop.f32.mrf.mxu0 }
  0xac   :  { %v162_v20 = vadd.f32 %v402_v19, %v161_v18 }
  0xae   :  { %v171_v23 = vmax.f32 %v162_v20, 0.0 }
  0xb1   :  { %v166_v21 = vpop.f32.mrf.mxu2 }
  0xb2   :  { %v167_v26 = vadd.f32 %v402_v19, %v166_v21 }
  0xb3   :  { %v163_v22 = vpop.f32.mrf.mxu0 }
  0xb4   :  { %v164_v24 = vadd.f32 %v402_v19, %v163_v22  ;;  %v173_v30 = vmax.f32 %v167_v26, 0.0 }
  0xb6   :  { %v172_v25 = vmax.f32 %v164_v24, 0.0 }
  0xb8   :  { %v175_v27 = vpack.c.bf16 %v172_v25, %v171_v23 }
  0xb9   :  { %v168_v28 = vpop.f32.mrf.mxu2 }
  0xba   :  { %v169_v29 = vadd.f32 %v402_v19, %v168_v28  ;;  %253 = vmatmul.bf16.vlgmr.msra.gmra.mxu1 %v175_v27 }
  0xbc   :  { %v174_v31 = vmax.f32 %v169_v29, 0.0 }
  0xbe   :  { %v176_v32 = vpack.c.bf16 %v174_v31, %v173_v30 }
  0xc0   :  { %258 = vmatmul.bf16.vlgmr.msra.gmra.mxu3 %v176_v32 }
 0x137   :  { %v254_v34 = vpop.f32.mrf.mxu1 }
 0x138   :  { %v255_v35 = vadd.f32 %v403_v33, %v254_v34 }
 0x13a   :  { %264 = vst [vmem:[#allocation8] sm:$0xff] %v255_v35 }
 0x13f   :  { %v256_v36 = vpop.f32.mrf.mxu1 }
 0x140   :  { %v257_v37 = vadd.f32 %v403_v33, %v256_v36 }
 0x142   :  { %265 = vst [vmem:[#allocation8 + $0x8] sm:$0xff] %v257_v37 }
 0x143   :  { %v259_v38 = vpop.f32.mrf.mxu3 }
 0x144   :  { %v260_v39 = vadd.f32 %v403_v33, %v259_v38 }
 0x146   :  { %266 = vst [vmem:[#allocation8 + $0x10] sm:$0xff] %v260_v39 }
 0x14b   :  { %v261_v40 = vpop.f32.mrf.mxu3 }
 0x14c   :  { %v262_v41 = vadd.f32 %v403_v33, %v261_v40 }
 0x14e   :  { %267 = vst [vmem:[#allocation8 + $0x18] sm:$0xff] %v262_v41 }
 0x14f   :  { %280 = dma.vmem_to_hbm [thread:$0]  %s273_s11, 512, %s275_s14, [#allocation4], %s512_s4, %s512_s4, %s513_s15  }
 0x150   :  { %504 = dma.done.wait [#allocation4], 512  }
 0x151   :  { %505 = vsyncadd [#allocation4], 4294966784 }
 0x152   :  { %285 = vsyncpa [#allocation3], 1 }
 0x153   :  { %286 = vsyncpa [#allocation6], 1 }
 0x154   :  { %287 = vsyncpa [#allocation4], 1 }

</bundles_post_ra>
